<compile_context>
chip_gen: v6e
topology: v6e:2x2x1
jax: 0.10.0
libtpu: 0.0.40
codegen_flags: <defaults>
</compile_context>

<pallas_src>
import numpy as np
import jax
import jax.numpy as jnp
from jax.experimental import pallas as pl
from jax.experimental.pallas import tpu as pltpu


# ----------------------------------------------------------------------------
# PIL-style bicubic resampling weights (host-side, trace time)
# ----------------------------------------------------------------------------
def _cubic(x, a=-0.5):
    """PIL's bicubic filter kernel (a = -0.5), vectorized."""
    x = np.abs(x)
    out = np.zeros_like(x)
    m1 = x < 1.0
    m2 = (x >= 1.0) & (x < 2.0)
    out[m1] = ((a + 2.0) * x[m1] - (a + 3.0)) * x[m1] * x[m1] + 1.0
    out[m2] = (((x[m2] - 5.0) * x[m2] + 8.0) * x[m2] - 4.0) * a
    return out


def _pil_bicubic_weights(in_size, out_size):
    """Dense (out_size, in_size) weight matrix matching PIL ImagingResample
    (BICUBIC, antialiased) for 1-D resampling."""
    scale = in_size / out_size
    filterscale = max(scale, 1.0)
    support = 2.0 * filterscale
    W = np.zeros((out_size, in_size), dtype=np.float64)
    for i in range(out_size):
        center = (i + 0.5) * scale
        xmin = int(max(center - support + 0.5, 0.0))
        xmax = int(min(center + support + 0.5, float(in_size)))
        xs = np.arange(xmin, xmax, dtype=np.float64)
        w = _cubic((xs + 0.5 - center) / filterscale)
        W[i, xmin:xmax] = w / w.sum()
    return W.astype(np.float32)


def _out_size(n, scale):
    # Module semantics are int(n / scale); use exact integer division when the
    # scale is integral to avoid float-rounding edge cases at large sizes.
    if isinstance(scale, int) or float(scale).is_integer():
        return n // int(scale)
    return int(n / scale)


# ----------------------------------------------------------------------------
# Hardware-aware tiling heuristics
# ----------------------------------------------------------------------------
def _tpu_vmem_capacity_bytes():
    try:
        return int(pltpu.get_tpu_info().vmem_capacity_bytes)
    except Exception:
        return 64 << 20          # conservative (v7x per-TC VMEM)


def _choose_tiles(BC, H, W, W_new, in_bytes, target_bytes, max_tb=32):
    """Returns (TB, TH).

    TH == H  -> single-step path: TB whole images per grid step, no scratch.
    TH <  H  -> row-tiled path:   one image per step, H tiled in TH-row blocks.
    """
    img_bytes = H * W * in_bytes
    if img_bytes <= target_bytes:
        tb_cap = min(max_tb, max(1, target_bytes // img_bytes), BC)
        divs = [d for d in range(1, BC + 1) if BC % d == 0 and d <= tb_cap]

        def score(d):
            # 1) lane-dense output slab (unmasked stores / dense DMA),
            # 2) keep >= 2 grid steps so both v7x TensorCores get work,
            # 3) then the largest channel group.
            return ((d * W_new) % 128 == 0, BC // d >= 2, d)

        return max(divs, key=score), H

    # Large image: one image per step, stream rows.  TH must divide H and be a
    # multiple of 16 (bf16 sublane packing of the hq scratch writes).
    fitting = [t for t in range(16, H, 16)
               if H % t == 0 and t * W * in_bytes <= target_bytes]
    if fitting:
        return 1, max(fitting)
    any_div = [t for t in range(16, H, 16) if H % t == 0]
    if any_div:
        return 1, min(any_div)
    return 1, H                   # can't tile rows cleanly; single-step path


def _weight_spec(block_shape, index_map):
    """Grid-invariant weight block: single-buffer it when the API allows."""
    if hasattr(pl, "Buffered"):
        try:
            return pl.BlockSpec(block_shape, index_map,
                                pipeline_mode=pl.Buffered(1))
        except TypeError:
            pass
    return pl.BlockSpec(block_shape, index_map)


# ----------------------------------------------------------------------------
# Quantization helpers (in-kernel, f32 math, bf16 cast last)
# ----------------------------------------------------------------------------
def _to_u8_vals(xf):
    # float image -> "uint8" pixel values.  Emulates tensor.mul(255).byte()
    # for inputs in [0, 1]; out-of-range inputs are clamped, not wrapped.
    # TODO(synk): torch .byte() modular wrap-around for out-of-range inputs is
    # not reproduced (clamp instead).
    return jnp.minimum(jnp.maximum(jnp.floor(xf * 255.0), 0.0), 255.0)


def _round_u8(v):
    # PIL stores each pass back as uint8: round half-up + clip.
    return jnp.minimum(jnp.maximum(jnp.floor(v + 0.5), 0.0), 255.0)


# ----------------------------------------------------------------------------
# Kernel 1: whole image(s) per grid step (common small/medium-image path)
# ----------------------------------------------------------------------------
def _bicubic_kernel_single(x_ref, wh_ref, wwt_ref, o_ref):
    # x_ref:   (TB, H, W)   input dtype (f32 or bf16)
    # wh_ref:  (H_new, H)   bf16, grid invariant
    # wwt_ref: (W, W_new)   bf16, grid invariant
    # o_ref:   (1, H_new, TB*W_new) f32, lane-dense slab (images along lanes)
    TB, H, W = x_ref.shape
    W_new = wwt_ref.shape[1]

    xf = x_ref[...].astype(jnp.float32)
    q = _to_u8_vals(xf)
    q2d = q.reshape(TB * H, W).astype(jnp.bfloat16)   # ints 0..255: exact in bf16

    # Horizontal (W) pass: one well-shaped MXU matmul, no accumulator scratch.
    h = jnp.dot(q2d, wwt_ref[...], preferred_element_type=jnp.float32)
    hq = _round_u8(h).astype(jnp.bfloat16)             # ints 0..255: exact in bf16

    wh = wh_ref[...]
    inv255 = 1.0 / 255.0
    if TB == 1:
        v = jnp.dot(wh, hq, preferred_element_type=jnp.float32)
        o_ref[0] = (_round_u8(v) * inv255).astype(o_ref.dtype)
    elif W_new % 128 == 0:
        # Lane-aligned: store each image's block straight into the slab
        # (unmasked stores, no concat, no vreg blow-up at large TB).
        for b in range(TB):                             # static, unrolled
            v = jnp.dot(wh, hq[b * H:(b + 1) * H, :],
                        preferred_element_type=jnp.float32)
            o_ref[0, :, b * W_new:(b + 1) * W_new] = (
                _round_u8(v) * inv255).astype(o_ref.dtype)
    else:
        # Narrow W_new (output is tiny): assemble the lane-dense slab once and
        # do a single dense store.
        pieces = []
        for b in range(TB):                             # static, unrolled
            v = jnp.dot(wh, hq[b * H:(b + 1) * H, :],
                        preferred_element_type=jnp.float32)
            pieces.append((_round_u8(v) * inv255).astype(o_ref.dtype))
        o_ref[0] = pieces[0] if TB == 1 else jnp.concatenate(pieces, axis=-1)


# ----------------------------------------------------------------------------
# Kernel 2: row-tiled path for large images (one image per step, H streamed)
# ----------------------------------------------------------------------------
def _bicubic_kernel_rowtiled(x_ref, wh_ref, wwt_ref, o_ref, hq_ref):
    # x_ref:   (1, TH, W)   row block of one image
    # wh_ref:  (H_new, H)   bf16, grid invariant
    # wwt_ref: (W, W_new)   bf16, grid invariant (resident, never re-streamed)
    # o_ref:   (1, H_new, W_new) f32
    # hq_ref:  (H, W_new)   bf16 scratch holding the rounded horizontal pass
    TH = x_ref.shape[1]
    h_idx = pl.program_id(1)

    q = _to_u8_vals(x_ref[0].astype(jnp.float32)).astype(jnp.bfloat16)
    hm = jnp.dot(q, wwt_ref[...], preferred_element_type=jnp.float32)
    row0 = pl.multiple_of(h_idx * TH, TH)
    # Assign (never read-modify-write): horizontal sums are complete per block.
    hq_ref[pl.ds(row0, TH), :] = _round_u8(hm).astype(jnp.bfloat16)

    @pl.when(h_idx == pl.num_programs(1) - 1)
    def _finalize():
        v = jnp.dot(wh_ref[...], hq_ref[...], preferred_element_type=jnp.float32)
        o_ref[0] = (_round_u8(v) * (1.0 / 255.0)).astype(o_ref.dtype)


# ----------------------------------------------------------------------------
# Wrapper
# ----------------------------------------------------------------------------
def batch_bicubic(x, scale=4, target_block_bytes=None):
    """x: (B, C, H, W) float (f32 or bf16).  Returns (B, C, H//s, W//s) f32."""
    B, C, H, W = x.shape
    H_new = _out_size(H, scale)
    W_new = _out_size(W, scale)
    BC = B * C

    # Keep the producer's dtype when it is already bf16/f32.  The kernel is
    # HBM-read bound, so a bf16 producer halves input bytes (~2x throughput);
    # we never insert a standalone f32->bf16 cast pass (extra HBM round trip).
    if x.dtype not in (jnp.float32, jnp.bfloat16):
        x = x.astype(jnp.float32)
    in_bytes = 2 if x.dtype == jnp.bfloat16 else 4
    x_flat = x.reshape(BC, H, W)

    # bf16 resampling weights: pixel values 0..255 stay exact; only the weights
    # are quantized (~2^-9 relative), and both MXU operands are native bf16.
    wh = jnp.asarray(_pil_bicubic_weights(H, H_new), dtype=jnp.bfloat16)      # (H_new, H)
    wwt = jnp.asarray(_pil_bicubic_weights(W, W_new).T, dtype=jnp.bfloat16)   # (W, W_new)

    vmem_cap = _tpu_vmem_capacity_bytes()
    if target_block_bytes is None:
        # v5e/v6e have 128 MiB physical VMEM -> bigger blocks amortize the
        # ~0.35us per-step overhead; v7x has 64 MiB -> keep blocks modest.
        target_block_bytes = (12 << 20) if vmem_cap >= (96 << 20) else (4 << 20)
    vmem_ceiling = (vmem_cap * 3) // 4        # leave headroom for the compiler

    TB, TH = _choose_tiles(BC, H, W, W_new, in_bytes, target_block_bytes)

    flops = 2 * BC * H * W * W_new + 2 * BC * H_new * H * W_new
    bytes_accessed = (BC * H * W * in_bytes
                      + (H_new * H + W * W_new) * 2
                      + BC * H_new * W_new * 4)
    cost = pl.CostEstimate(flops=int(flops), transcendentals=0,
                           bytes_accessed=int(bytes_accessed))

    w_bytes = (H_new * H + W * W_new) * 2

    if TH == H:
        # ---------------- single-step path (no scratch, no RMW) -------------
        G = BC // TB
        in_blk = TB * H * W * in_bytes
        out_blk = H_new * TB * W_new * 4
        est = 2 * in_blk + 2 * out_blk + w_bytes + 2 * in_blk + out_blk + (4 << 20)
        vmem_limit = int(min(max(est, 32 << 20), vmem_ceiling))

        out_slabs = pl.pallas_call(
            _bicubic_kernel_single,
            out_shape=jax.ShapeDtypeStruct((G, H_new, TB * W_new), jnp.float32),
            grid_spec=pltpu.PrefetchScalarGridSpec(
                num_scalar_prefetch=0,
                grid=(G,),
                in_specs=[
                    pl.BlockSpec((TB, H, W), lambda g: (g, 0, 0)),
                    _weight_spec((H_new, H), lambda g: (0, 0)),
                    _weight_spec((W, W_new), lambda g: (0, 0)),
                ],
                out_specs=pl.BlockSpec((1, H_new, TB * W_new),
                                       lambda g: (g, 0, 0)),
            ),
            compiler_params=pltpu.CompilerParams(
                dimension_semantics=("parallel",),
                vmem_limit_bytes=vmem_limit),
            cost_estimate=cost,
        )(x_flat, wh, wwt)

        # De-interleave the lane-dense slabs on the (much smaller) output.
        out = out_slabs.reshape(G, H_new, TB, W_new)
        out = jnp.transpose(out, (0, 2, 1, 3)).reshape(B, C, H_new, W_new)
        return out

    # -------------------- row-tiled path (large images) ---------------------
    NH = H // TH
    in_blk = TH * W * in_bytes
    out_blk = H_new * W_new * 4
    hq_bytes = H * W_new * 2
    est = (2 * in_blk + 2 * out_blk + w_bytes + hq_bytes
           + 2 * in_blk + out_blk + (4 << 20))
    vmem_limit = int(min(max(est, 32 << 20), vmem_ceiling))

    out = pl.pallas_call(
        _bicubic_kernel_rowtiled,
        out_shape=jax.ShapeDtypeStruct((BC, H_new, W_new), jnp.float32),
        grid_spec=pltpu.PrefetchScalarGridSpec(
            num_scalar_prefetch=0,
            grid=(BC, NH),
            in_specs=[
                pl.BlockSpec((1, TH, W), lambda g, h: (g, h, 0)),
                _weight_spec((H_new, H), lambda g, h: (0, 0)),
                _weight_spec((W, W_new), lambda g, h: (0, 0)),
            ],
            out_specs=pl.BlockSpec((1, H_new, W_new), lambda g, h: (g, 0, 0)),
            scratch_shapes=[pltpu.VMEM((H, W_new), jnp.bfloat16)],
        ),
        compiler_params=pltpu.CompilerParams(
            dimension_semantics=("parallel", "arbitrary"),
            vmem_limit_bytes=vmem_limit),
        cost_estimate=cost,
    )(x_flat, wh, wwt)
    return out.reshape(B, C, H_new, W_new)


# ----------------------------------------------------------------------------
# Numpy reference of the same algorithm (f64 accumulation, same bf16 weights,
# so the comparison isolates the Pallas implementation itself)
# ----------------------------------------------------------------------------
def _reference_numpy(x, scale):
    x = np.asarray(x, dtype=np.float64)
    B, C, H, W = x.shape
    H_new, W_new = _out_size(H, scale), _out_size(W, scale)
    wh = np.asarray(jnp.asarray(_pil_bicubic_weights(H, H_new), jnp.bfloat16),
                    dtype=np.float64)                                  # (H_new, H)
    wwt = np.asarray(jnp.asarray(_pil_bicubic_weights(W, W_new).T, jnp.bfloat16),
                     dtype=np.float64)                                 # (W, W_new)
    q = np.clip(np.floor(x * 255.0), 0.0, 255.0)
    hq = np.clip(np.floor(q @ wwt + 0.5), 0.0, 255.0)                  # horizontal
    out = np.clip(np.floor(wh @ hq + 0.5), 0.0, 255.0) / 255.0         # vertical
    return out.astype(np.float32)


if __name__ == "__main__":
    key = jax.random.PRNGKey(0)
    k1, k2 = jax.random.split(key)
    scale = 4

    # 1) Common path (whole images per step, no scratch), module-like shape.
    B, C, H, W = 2, 4, 16, 16
    x = jax.random.uniform(k1, (B, C, H, W), dtype=jnp.float32)
    out = jax.block_until_ready(batch_bicubic(x, scale=scale))
    assert out.shape == (B, C, H // scale, W // scale), out.shape
    assert out.dtype == jnp.float32
    assert bool(jnp.all(jnp.isfinite(out)))
    assert bool(jnp.all((out >= 0.0) & (out <= 1.0)))
    ref = _reference_numpy(np.asarray(x), scale)
    err = float(np.max(np.abs(np.asarray(out) - ref)))
    assert err <= 4.0 / 255.0 + 1e-6, f"single-step path error {err}"

    # 2) Row-tiled (large-image) path, exercised at a small size by shrinking
    #    the per-step byte budget so the H-tiling kernel is compiled/validated.
    x2 = jax.random.uniform(k2, (1, 1, 64, 64), dtype=jnp.float32)
    out2 = jax.block_until_ready(
        batch_bicubic(x2, scale=scale, target_block_bytes=1 << 10))
    assert out2.shape == (1, 1, 16, 16), out2.shape
    ref2 = _reference_numpy(np.asarray(x2), scale)
    err2 = float(np.max(np.abs(np.asarray(out2) - ref2)))
    assert err2 <= 4.0 / 255.0 + 1e-6, f"row-tiled path error {err2}"

    print("KERNEL_OK")
</pallas_src>

<mosaic_0001>
module attributes {stable_mosaic.version = 11 : i64} {
  func.func @_bicubic_kernel_single(%arg0: i32, %arg1: memref<4x16x16xf32, #tpu.memory_space<vmem>>, %arg2: memref<4x16xbf16, #tpu.memory_space<vmem>>, %arg3: memref<16x4xbf16, #tpu.memory_space<vmem>>, %arg4: memref<1x4x16xf32, #tpu.memory_space<vmem>>) attributes {dimension_semantics = [#tpu.dimension_semantics<parallel>], iteration_bounds = array<i64: 2>, scalar_prefetch = 0 : i64, scratch_operands = 0 : i64, tpu.core_type = #tpu.core_type<tc>, window_params = [{transform_indices = @transform_0, window_bounds = array<i64: 4, 16, 16>}, {pipeline_mode = #tpu.pipeline_mode<synchronous>, transform_indices = @transform_1, window_bounds = array<i64: 4, 16>}, {pipeline_mode = #tpu.pipeline_mode<synchronous>, transform_indices = @transform_2, window_bounds = array<i64: 16, 4>}, {transform_indices = @transform_3, window_bounds = array<i64: 1, 4, 16>}]} {
    %c0 = arith.constant 0 : index
    %c0_0 = arith.constant 0 : index
    %c0_1 = arith.constant 0 : index
    %0 = vector.load %arg1[%c0, %c0_0, %c0_1] : memref<4x16x16xf32, #tpu.memory_space<vmem>>, vector<4x16x16xf32>
    %cst = arith.constant 2.550000e+02 : f32
    %1 = vector.broadcast %cst : f32 to vector<4x16x16xf32>
    %2 = arith.mulf %0, %1 : vector<4x16x16xf32>
    %3 = math.floor %2 : vector<4x16x16xf32>
    %cst_2 = arith.constant 0.000000e+00 : f32
    %4 = vector.broadcast %cst_2 : f32 to vector<4x16x16xf32>
    %5 = arith.maximumf %3, %4 : vector<4x16x16xf32>
    %cst_3 = arith.constant 2.550000e+02 : f32
    %6 = vector.broadcast %cst_3 : f32 to vector<4x16x16xf32>
    %7 = arith.minimumf %5, %6 : vector<4x16x16xf32>
    %8 = vector.shape_cast %7 : vector<4x16x16xf32> to vector<64x16xf32>
    %9 = arith.truncf %8 : vector<64x16xf32> to vector<64x16xbf16>
    %c0_4 = arith.constant 0 : index
    %c0_5 = arith.constant 0 : index
    %10 = vector.load %arg3[%c0_4, %c0_5] : memref<16x4xbf16, #tpu.memory_space<vmem>>, vector<16x4xbf16>
    %cst_6 = arith.constant dense<0.000000e+00> : vector<64x4xf32>
    %11 = tpu.matmul %9, %10, %cst_6 {dimension_numbers = #tpu.dot_dimension_numbers<[1], [0], [0], [1], [0, 0, 1, 1], [], []>} : vector<64x16xbf16>, vector<16x4xbf16>, vector<64x4xf32> -> vector<64x4xf32>
    %cst_7 = arith.constant 5.000000e-01 : f32
    %12 = vector.broadcast %cst_7 : f32 to vector<64x4xf32>
    %13 = arith.addf %11, %12 : vector<64x4xf32>
    %14 = math.floor %13 : vector<64x4xf32>
    %cst_8 = arith.constant 0.000000e+00 : f32
    %15 = vector.broadcast %cst_8 : f32 to vector<64x4xf32>
    %16 = arith.maximumf %14, %15 : vector<64x4xf32>
    %cst_9 = arith.constant 2.550000e+02 : f32
    %17 = vector.broadcast %cst_9 : f32 to vector<64x4xf32>
    %18 = arith.minimumf %16, %17 : vector<64x4xf32>
    %19 = arith.truncf %18 : vector<64x4xf32> to vector<64x4xbf16>
    %c0_10 = arith.constant 0 : index
    %c0_11 = arith.constant 0 : index
    %20 = vector.load %arg2[%c0_10, %c0_11] : memref<4x16xbf16, #tpu.memory_space<vmem>>, vector<4x16xbf16>
    %21 = vector.extract_strided_slice %19 {offsets = [0, 0], sizes = [16, 4], strides = [1, 1]} : vector<64x4xbf16> to vector<16x4xbf16>
    %cst_12 = arith.constant dense<0.000000e+00> : vector<4x4xf32>
    %22 = tpu.matmul %20, %21, %cst_12 {dimension_numbers = #tpu.dot_dimension_numbers<[1], [0], [0], [1], [0, 0, 1, 1], [], []>} : vector<4x16xbf16>, vector<16x4xbf16>, vector<4x4xf32> -> vector<4x4xf32>
    %cst_13 = arith.constant 5.000000e-01 : f32
    %23 = vector.broadcast %cst_13 : f32 to vector<4x4xf32>
    %24 = arith.addf %22, %23 : vector<4x4xf32>
    %25 = math.floor %24 : vector<4x4xf32>
    %cst_14 = arith.constant 0.000000e+00 : f32
    %26 = vector.broadcast %cst_14 : f32 to vector<4x4xf32>
    %27 = arith.maximumf %25, %26 : vector<4x4xf32>
    %cst_15 = arith.constant 2.550000e+02 : f32
    %28 = vector.broadcast %cst_15 : f32 to vector<4x4xf32>
    %29 = arith.minimumf %27, %28 : vector<4x4xf32>
    %cst_16 = arith.constant 0.00392156886 : f32
    %30 = vector.broadcast %cst_16 : f32 to vector<4x4xf32>
    %31 = arith.mulf %29, %30 : vector<4x4xf32>
    %32 = vector.extract_strided_slice %19 {offsets = [16, 0], sizes = [16, 4], strides = [1, 1]} : vector<64x4xbf16> to vector<16x4xbf16>
    %cst_17 = arith.constant dense<0.000000e+00> : vector<4x4xf32>
    %33 = tpu.matmul %20, %32, %cst_17 {dimension_numbers = #tpu.dot_dimension_numbers<[1], [0], [0], [1], [0, 0, 1, 1], [], []>} : vector<4x16xbf16>, vector<16x4xbf16>, vector<4x4xf32> -> vector<4x4xf32>
    %cst_18 = arith.constant 5.000000e-01 : f32
    %34 = vector.broadcast %cst_18 : f32 to vector<4x4xf32>
    %35 = arith.addf %33, %34 : vector<4x4xf32>
    %36 = math.floor %35 : vector<4x4xf32>
    %cst_19 = arith.constant 0.000000e+00 : f32
    %37 = vector.broadcast %cst_19 : f32 to vector<4x4xf32>
    %38 = arith.maximumf %36, %37 : vector<4x4xf32>
    %cst_20 = arith.constant 2.550000e+02 : f32
    %39 = vector.broadcast %cst_20 : f32 to vector<4x4xf32>
    %40 = arith.minimumf %38, %39 : vector<4x4xf32>
    %cst_21 = arith.constant 0.00392156886 : f32
    %41 = vector.broadcast %cst_21 : f32 to vector<4x4xf32>
    %42 = arith.mulf %40, %41 : vector<4x4xf32>
    %43 = vector.extract_strided_slice %19 {offsets = [32, 0], sizes = [16, 4], strides = [1, 1]} : vector<64x4xbf16> to vector<16x4xbf16>
    %cst_22 = arith.constant dense<0.000000e+00> : vector<4x4xf32>
    %44 = tpu.matmul %20, %43, %cst_22 {dimension_numbers = #tpu.dot_dimension_numbers<[1], [0], [0], [1], [0, 0, 1, 1], [], []>} : vector<4x16xbf16>, vector<16x4xbf16>, vector<4x4xf32> -> vector<4x4xf32>
    %cst_23 = arith.constant 5.000000e-01 : f32
    %45 = vector.broadcast %cst_23 : f32 to vector<4x4xf32>
    %46 = arith.addf %44, %45 : vector<4x4xf32>
    %47 = math.floor %46 : vector<4x4xf32>
    %cst_24 = arith.constant 0.000000e+00 : f32
    %48 = vector.broadcast %cst_24 : f32 to vector<4x4xf32>
    %49 = arith.maximumf %47, %48 : vector<4x4xf32>
    %cst_25 = arith.constant 2.550000e+02 : f32
    %50 = vector.broadcast %cst_25 : f32 to vector<4x4xf32>
    %51 = arith.minimumf %49, %50 : vector<4x4xf32>
    %cst_26 = arith.constant 0.00392156886 : f32
    %52 = vector.broadcast %cst_26 : f32 to vector<4x4xf32>
    %53 = arith.mulf %51, %52 : vector<4x4xf32>
    %54 = vector.extract_strided_slice %19 {offsets = [48, 0], sizes = [16, 4], strides = [1, 1]} : vector<64x4xbf16> to vector<16x4xbf16>
    %cst_27 = arith.constant dense<0.000000e+00> : vector<4x4xf32>
    %55 = tpu.matmul %20, %54, %cst_27 {dimension_numbers = #tpu.dot_dimension_numbers<[1], [0], [0], [1], [0, 0, 1, 1], [], []>} : vector<4x16xbf16>, vector<16x4xbf16>, vector<4x4xf32> -> vector<4x4xf32>
    %cst_28 = arith.constant 5.000000e-01 : f32
    %56 = vector.broadcast %cst_28 : f32 to vector<4x4xf32>
    %57 = arith.addf %55, %56 : vector<4x4xf32>
    %58 = math.floor %57 : vector<4x4xf32>
    %cst_29 = arith.constant 0.000000e+00 : f32
    %59 = vector.broadcast %cst_29 : f32 to vector<4x4xf32>
    %60 = arith.maximumf %58, %59 : vector<4x4xf32>
    %cst_30 = arith.constant 2.550000e+02 : f32
    %61 = vector.broadcast %cst_30 : f32 to vector<4x4xf32>
    %62 = arith.minimumf %60, %61 : vector<4x4xf32>
    %cst_31 = arith.constant 0.00392156886 : f32
    %63 = vector.broadcast %cst_31 : f32 to vector<4x4xf32>
    %64 = arith.mulf %62, %63 : vector<4x4xf32>
    %65 = tpu.concatenate %31, %42, %53, %64 in 1 : vector<4x4xf32>, vector<4x4xf32>, vector<4x4xf32>, vector<4x4xf32> -> vector<4x16xf32>
    %c0_32 = arith.constant 0 : index
    %c0_33 = arith.constant 0 : index
    %c0_34 = arith.constant 0 : index
    %66 = vector.load %arg4[%c0_32, %c0_33, %c0_34] : memref<1x4x16xf32, #tpu.memory_space<vmem>>, vector<1x4x16xf32>
    %67 = vector.shape_cast %66 : vector<1x4x16xf32> to vector<4x16xf32>
    %68 = vector.shape_cast %65 : vector<4x16xf32> to vector<1x4x16xf32>
    tpu.vector_store %arg4[%c0_32, %c0_33, %c0_34], %68 {strides = array<i32>} : memref<1x4x16xf32, #tpu.memory_space<vmem>>, vector<1x4x16xf32>,
    return
  }
  func.func @transform_0(%arg0: i32) -> (i32, i32, i32) {
    %c0_i32 = arith.constant 0 : i32
    %c0_i32_0 = arith.constant 0 : i32
    %c0_i32_1 = arith.constant 0 : i32
    return %arg0, %c0_i32, %c0_i32_0 : i32, i32, i32
  }
  func.func @transform_1(%arg0: i32) -> (i32, i32) {
    %c0_i32 = arith.constant 0 : i32
    %c0_i32_0 = arith.constant 0 : i32
    %c0_i32_1 = arith.constant 0 : i32
    return %c0_i32, %c0_i32_0 : i32, i32
  }
  func.func @transform_2(%arg0: i32) -> (i32, i32) {
    %c0_i32 = arith.constant 0 : i32
    %c0_i32_0 = arith.constant 0 : i32
    %c0_i32_1 = arith.constant 0 : i32
    return %c0_i32, %c0_i32_0 : i32, i32
  }
  func.func @transform_3(%arg0: i32) -> (i32, i32, i32) {
    %c0_i32 = arith.constant 0 : i32
    %c0_i32_0 = arith.constant 0 : i32
    %c0_i32_1 = arith.constant 0 : i32
    return %arg0, %c0_i32, %c0_i32_0 : i32, i32, i32
  }
}

</mosaic_0001>

<bundles_post_ra>
// kernel: tpu_custom_call.1
= control target key start
LH: loop header
LB: loop body
LE: loop exit
PB: predicated region body
PF: predicated region fallthrough
CT: control target
= control target key end

     0   :  { %8 = vsyncpa [#allocation3], 0  ;;  %s1048_s0 = inlined_call_operand.hbm [shape: f32[8,16,16], index: 0, kind: input, shape index: {}]   ;;  %s1049_s1 = inlined_call_operand.vmem [shape: bf16[4,16], index: 1, kind: input, shape index: {}]   ;;  %s1050_s2 = inlined_call_operand.vmem [shape: bf16[16,4], index: 2, kind: input, shape index: {}]   ;;  %s1051_s3 = inlined_call_operand.hbm [shape: f32[2,4,16], index: 3, kind: output, shape index: {}]  }
   0x1   :  { %10 = vsyncpa [#allocation3 + $0x1], 0 }
   0x2   :  { %11 = vsyncpa [#allocation4], 0 }
   0x3   :  { %13 = vsyncpa [#allocation4 + $0x1], 0  ;;  %s883_s12 = smov 0   ;;  %s885_s13 = smov 0  }
   0x4   :  { %s887_s14 = smov 0   ;;  %s889_s15 = smov 0  }
   0x5 LB: > { %s904_s16 = sadd.s32 4294967295, %s852_s15   ;;  %s634_s17 = sadd.s32 4294967294, %s852_s15   ;;  %s852_s15 = sphi %s889_s15, %s1066_s15   ;;  %s848_s14 = sphi %s887_s14, %s1065_s14   ;;  %s844_s13 = sphi %s885_s13, %s1064_s13   ;;  %s840_s12 = sphi %s883_s12, %s1063_s12  }
   0x6   : > { %s908_s18 = sadd.s32 1, %s852_s15   ;;  %s26_s19 = sadd.s32 1, %s848_s14 }
   0x7   : > { %s23_s20 = ssub.s32 %s852_s15, %s908_s18  ;;  %p33_p0 = scmp.ne.s32.totalorder %s848_s14, %s844_s13 }
   0x8   : > { %p24_p1 = scmp.eq.s32.totalorder %s23_s20, 0  ;;  %p34_p2 = scmp.eq.s32.totalorder %s852_s15, 0 }
   0x9   : > { %p39_p3 = scmp.ne.s32.totalorder %s844_s13, %s840_s12  ;;  %p40_p4 = scmp.eq.s32.totalorder %s904_s16, 0 }
   0xa   : > { %s920_s21 = scalar_select %p24_p1, %s848_s14, %s26_s19  }
   0xb   : > { %p922_p5 = por %p34_p2, %p33_p0  ;;  %p926_p6 = por %p40_p4, %p39_p3 }
   0xc   : > { %p105_p7 = scmp.eq.s32.totalorder %s904_s16, 1  ;;  %p111_p8 = scmp.eq.s32.totalorder %s634_s17, 1 }
   0xd   : > { %s1055_s23 = scalar_select %p926_p6, 1, 0 }
   0xe   : > { %p718_p10 = scmp.lt.s32.totalorder %s852_s15, 2  ;;  %p933_p11 = por %p105_p7, %p33_p0 }
   0xf   : > { %p937_p12 = por %p111_p8, %p39_p3  ;;  %s137_s26 = sand.u32 1, %s848_s14  }
  0x10   : > { %s1056_s24 = scalar_select %p933_p11, 1, 0 }
  0x11   : > { %s1057_s25 = scalar_select %p937_p12, 1, 0 }
  0x12   : > { %s658_s27 = sshll.u32 %s852_s15, 10  ;;  %s637_s28 = sshll.u32 %s137_s26, 6 }
  0x13   : > { %s946_s4 = scalar_lea.hbm %s1048_s0, %s658_s27  ;;  %s141_s5 = scalar_lea.vmem [#allocation2], %s637_s28 }
  0x14   : > { %s149_s6 = sshll.u32 %s141_s5, 4  ;;  %p950_p13 = pnand %p718_p10, %p922_p5  ;;  %s954_s6 = int_to_ptr.vmem [resolvable:$true] %s149_s6 }
  0x15   : > { %s956_s8 = scalar_lea.sflag [#allocation3], %s137_s26  ;;  %s760_s9 = scalar_lea.hbm %s946_s4, 1024 }
  0x16   : > { %p761_p0 = scmp.ne.s32.totalorder %s946_s4, %s760_s9  ;;  %p762_p1 = pneg %p950_p13 }
  0x17   : > { %s765_s17 = scalar_lea.hbm %s1048_s0, 2048  ;;  %p766_p4 = scmp.lt.s32.totalorder %s946_s4, %s1048_s0 }
  0x18   : > { %p763_p2 = pnand %p762_p1, %p761_p0  ;;  %p767_p5 = scmp.lt.s32.totalorder %s765_s17, %s760_s9 }
  0x1a   : > { %p764_p3 = pneg %p763_p2  ;;  %p768_p7 = por %p767_p5, %p766_p4 }
  0x1c   : > { %p769_p8 = pnand %p768_p7, %p764_p3 }
  0x1e   : > { %772 = shalt.err (!%p769_p8)
}
  0x1f   : > { %s773_s22 = scalar_lea.vmem %s954_s6, 1024  ;;  %s854_s26 = smov [#allocation2]  }
  0x20   : > { %p774_p10 = scmp.ne.s32.totalorder %s954_s6, %s773_s22  ;;  %s778_s27 = sshll.u32 %s854_s26, 4  ;;  %s779_s27 = int_to_ptr.vmem [resolvable:$false] %s778_s27 }
  0x21   : > { %s780_s28 = scalar_lea.vmem %s779_s27, 2048  ;;  %p781_p2 = scmp.lt.s32.totalorder %s954_s6, %s779_s27 }
  0x22   : > { %p776_p9 = pnand %p774_p10, %p762_p1  ;;  %p782_p12 = scmp.lt.s32.totalorder %s780_s28, %s773_s22 }
  0x24   : > { %p777_p0 = pneg %p776_p9  ;;  %p783_p11 = por %p782_p12, %p781_p2 }
  0x26   : > { %p784_p6 = pnand %p783_p11, %p777_p0 }
  0x28   : > { %787 = shalt.err (!%p784_p6)
}
  0x29   : > { %s855_s29 = smov 128   ;;  %s856_s30 = smov 8  }
  0x2a   : > { %713 = dma.hbm_to_vmem [thread:$0]  (!%p950_p13), %s946_s4, 1024, %s954_s6, %s956_s8, %s855_s29, %s855_s29, %s856_s30  }
  0x2b   : > { %p641_p9 = scmp.ge.s32.totalorder %s852_s15, 1  ;;  %p157_p1 = scmp.lt.s32.totalorder %s852_s15, 3 }
  0x2d   : > { %p158_p3 = pnand %p641_p9, %p157_p1 }
  0x2e   : > { %s980_s5 = sand.u32 (!%p158_p3), 1, %s844_s13   ;;  %p1059_p6 = scmp.ne.s32.totalorder (!%p158_p3), %s1055_s23, 0 }
  0x2f   : > { %161 = sbr.rel (%p158_p3) target bundleno = 626 (0x272), region = 32  ;;  %s642_s9 = sshll.u32 (!%p158_p3), %s980_s5, 6 }
  0x30   : > { %s164_s10 = scalar_lea.sflag (!%p158_p3), [#allocation3], %s980_s5  ;;  %s167_s11 = scalar_lea.vmem (!%p158_p3), [#allocation2], %s642_s9 }
  0x34   : > { %831 = dma.done.wait (%p1059_p6), %s164_s10, 1024  }
  0x35   : > { %833 = vsyncadd (%p1059_p6), %s164_s10, 4294966272  ;;  %v759_v0 = vld [vmem:[%s1050_s2] sm:$0xff]   ;;  %v193_v2 = vld [vmem:[%s167_s11 + $0x8] sm:$0xff]  ;;  %vm244_vm0 = vcmask 130048   ;;  %v857_v45 = vmov 0.0   ;;  %vm858_vm1 = vmmov 0  }
  0x36   : > { %v192_v1 = vld [vmem:[%s167_s11] sm:$0xff]  ;;  %v194_v3 = vld [vmem:[%s167_s11 + $0x10] sm:$0xff]  ;;  %672 = vmatprep.subr.bf16.mxu0 %v759_v0  ;;  %v201_v5 = vmul.f32 255.0, %v193_v2  ;;  %v195_v6 = vld [vmem:[%s167_s11 + $0x18] sm:$0xff]  ;;  %682 = vmatprep.subr.bf16.mxu1 %v857_v45  ;;  %s859_s8 = smov 4   ;;  %s860_s17 = smov 8  }
  0x37   : > { %v200_v4 = vmul.f32 255.0, %v192_v1  ;;  %v202_v7 = vmul.f32 255.0, %v194_v3  ;;  %v196_v8 = vld [vmem:[%s167_s11 + $0x20] sm:$0xff]  ;;  %v197_v9 = vld [vmem:[%s167_s11 + $0x28] sm:$0xff]  ;;  %673 = vmatpush3.bf16.msra.mxu0 %v759_v0  ;;  %v203_v10 = vmul.f32 255.0, %v195_v6  ;;  %v198_v13 = vld [vmem:[%s167_s11 + $0x30] sm:$0xff]  ;;  %684 = vmatprep.mubr.msk.bf16.mxu1 %vm858_vm1, %v857_v45 }
  0x38   : > { %v204_v11 = vmul.f32 255.0, %v196_v8  ;;  %v205_v12 = vmul.f32 255.0, %v197_v9  ;;  %v199_v14 = vld [vmem:[%s167_s11 + $0x38] sm:$0xff]  ;;  %v209_v16 = vfloor.f32 %v201_v5  ;;  %v206_v18 = vmul.f32 255.0, %v198_v13  ;;  %694 = vmatprep.subr.bf16.mxu0 %v857_v45  ;;  %s861_s19 = smov 12   ;;  %s643_s20 = sshll.u32 %s980_s5, 2 }
  0x39   : > { %v208_v15 = vfloor.f32 %v200_v4  ;;  %v210_v17 = vfloor.f32 %v202_v7  ;;  %v211_v19 = vfloor.f32 %v203_v10  ;;  %v207_v22 = vmul.f32 255.0, %v199_v14  ;;  %s654_s22 = sshll.u32 %s904_s16, 6  ;;  %s189_s26 = scalar_lea.vmem [#allocation5], %s643_s20 }
  0x3a   : > { %v212_v20 = vfloor.f32 %v204_v11  ;;  %v213_v21 = vfloor.f32 %v205_v12  ;;  %v217_v24 = vmax.f32 %v209_v16, 0.0  ;;  %v214_v26 = vfloor.f32 %v206_v18  ;;  %v350_v16 = vld [vmem:[%s1049_s1] sm:$0x3]  ;;  %s564_s27 = sshll.u32 %s189_s26, 4  ;;  %s1011_s30 = scalar_lea.hbm %s1051_s3, %s654_s22  ;;  %s565_s27 = int_to_ptr.vmem [resolvable:$true] %s564_s27 }
  0x3b   : > { %v216_v23 = vmax.f32 %v208_v15, 0.0  ;;  %v218_v25 = vmax.f32 %v210_v17, 0.0  ;;  %v219_v27 = vmax.f32 %v211_v19, 0.0  ;;  %v215_v30 = vfloor.f32 %v207_v22  ;;  %s551_s9 = scalar_lea.sflag [#allocation4], %s980_s5  ;;  %s788_s10 = scalar_lea.vmem %s565_s27, 64 }
  0x3c   : > { %v220_v28 = vmax.f32 %v212_v20, 0.0  ;;  %v221_v29 = vmax.f32 %v213_v21, 0.0  ;;  %v225_v32 = vmin.f32 %v217_v24, 255.0  ;;  %v222_v34 = vmax.f32 %v214_v26, 0.0  ;;  %p789_p11 = scmp.ne.s32.totalorder %s565_s27, %s788_s10  ;;  %p1060_p12 = scmp.ne.s32.totalorder %s1056_s24, 0 }
  0x3d   : > { %v224_v31 = vmin.f32 %v216_v23, 255.0  ;;  %v226_v33 = vmin.f32 %v218_v25, 255.0  ;;  %v227_v35 = vmin.f32 %v219_v27, 255.0  ;;  %v223_v38 = vmax.f32 %v215_v30, 0.0  ;;  %s862_s16 = smov [#allocation5]  }
  0x3e   : > { %v228_v36 = vmin.f32 %v220_v28, 255.0  ;;  %v229_v37 = vmin.f32 %v221_v29, 255.0  ;;  %v230_v42 = vmin.f32 %v222_v34, 255.0  ;;  %vm542_vm2 = vcmask 31744   ;;  %p790_p13 = pnand %p789_p11, %p1060_p12  ;;  %s792_s11 = sshll.u32 %s862_s16, 4  ;;  %s793_s11 = int_to_ptr.vmem [resolvable:$false] %s792_s11 }
  0x3f   : > { %v232_v39 = vpack.c.bf16 %v225_v32, %v224_v31  ;;  %v233_v40 = vpack.c.bf16 %v227_v35, %v226_v33  ;;  %v231_v43 = vmin.f32 %v223_v38, 255.0  ;;  %vm544_vm3 = vcmask 64512   ;;  %s794_s7 = scalar_lea.vmem %s793_s11, 128  ;;  %p795_p5 = scmp.lt.s32.totalorder %s565_s27, %s793_s11 }
  0x40   : > { %v234_v41 = vpack.c.bf16 %v229_v37, %v228_v36  ;;  %vm546_vm4 = vcmask 97280   ;;  %vm548_vm5 = vcmask 125952   ;;  %p791_p4 = pneg %p790_p13  ;;  %p796_p7 = scmp.lt.s32.totalorder %s794_s7, %s788_s10 }
  0x41   : > { %674 = vmatprep.mubr.msk.bf16.mxu0 %vm244_vm0, %v232_v39  ;;  %v235_v44 = vpack.c.bf16 %v231_v43, %v230_v42 }
  0x42   : > { %675 = vmatmul.mubr.msk.bf16.vlgmr.msra.gmra.mxu0 %vm244_vm0, %v233_v40  ;;  %p797_p8 = por %p796_p7, %p795_p5 }
  0x43   : > { %678 = vmatprep.mubr.msk.bf16.mxu0 %vm244_vm0, %v234_v41 }
  0x44   : > { %p798_p10 = pnand %p797_p8, %p791_p4 }
  0x4a   : > { %679 = vmatmul.mubr.msk.bf16.gmra.mxu0 %vm244_vm0, %v235_v44 }
  0x4b   : > { %696 = vmatprep.mubr.msk.bf16.mxu0 %vm858_vm1, %v857_v45 }
 0x102   : > { %v676_v46 = vpop.f32.mrf.mxu0 }
 0x103   : > { %v300_v49 = vadd.f32 0.5, %v676_v46 }
 0x104   : > { %v291_v47 = vpop.f32.mrf.mxu0 }
 0x105   : > { %v292_v48 = vadd.f32 0.5, %v291_v47  ;;  %v324_v56 = vfloor.f32 %v300_v49 }
 0x106   : > { %v677_v50 = vpop.f32.mrf.mxu0 }
 0x107   : > { %v322_v51 = vfloor.f32 %v292_v48  ;;  %v303_v52 = vadd.f32 0.5, %v677_v50  ;;  %v332_v1 = vmax.f32 %v324_v56, 0.0 }
 0x108   : > { %v294_v53 = vpop.f32.mrf.mxu0 }
 0x109   : > { %v325_v54 = vfloor.f32 %v303_v52  ;;  %v295_v55 = vadd.f32 0.5, %v294_v53  ;;  %v330_v58 = vmax.f32 %v322_v51, 0.0  ;;  %v340_v13 = vmin.f32 %v332_v1, 255.0 }
 0x10a   : > { %v680_v57 = vpop.f32.mrf.mxu0 }
 0x10b   : > { %v323_v59 = vfloor.f32 %v295_v55  ;;  %v333_v60 = vmax.f32 %v325_v54, 0.0  ;;  %v316_v63 = vadd.f32 0.5, %v680_v57  ;;  %v338_v3 = vmin.f32 %v330_v58, 255.0 }
 0x10c   : > { %v307_v61 = vpop.f32.mrf.mxu0 }
 0x10d   : > { %v331_v62 = vmax.f32 %v323_v59, 0.0  ;;  %v308_v0 = vadd.f32 0.5, %v307_v61  ;;  %v341_v6 = vmin.f32 %v333_v60, 255.0  ;;  %v328_v9 = vfloor.f32 %v316_v63 }
 0x10e   : > { %v681_v2 = vpop.f32.mrf.mxu0 }
 0x10f   : > { %v339_v4 = vmin.f32 %v331_v62, 255.0  ;;  %v326_v5 = vfloor.f32 %v308_v0  ;;  %v319_v7 = vadd.f32 0.5, %v681_v2  ;;  %v347_v17 = vpack.c.bf16 %v341_v6, %v340_v13 }
 0x110   : > { %v310_v8 = vpop.f32.mrf.mxu0  ;;  %v336_v18 = vmax.f32 %v328_v9, 0.0 }
 0x111   : > { %v334_v10 = vmax.f32 %v326_v5, 0.0  ;;  %v311_v11 = vadd.f32 0.5, %v310_v8  ;;  %v346_v12 = vpack.c.bf16 %v339_v4, %v338_v3  ;;  %v329_v14 = vfloor.f32 %v319_v7 }
 0x112   : > { %v344_v23 = vmin.f32 %v336_v18, 255.0 }
 0x113   : > { %v327_v15 = vfloor.f32 %v311_v11  ;;  %683 = vmatpush3.bf16.msra.mxu1 %v346_v12  ;;  %v342_v19 = vmin.f32 %v334_v10, 255.0  ;;  %v337_v20 = vmax.f32 %v329_v14, 0.0 }
 0x114   : > { %688 = vmatprep.subr.bf16.mxu1 %v857_v45 }
 0x115   : > { %v335_v21 = vmax.f32 %v327_v15, 0.0  ;;  %v345_v24 = vmin.f32 %v337_v20, 255.0 }
 0x116   : > { %685 = vmatmul.mubr.msk.bf16.vlgmr.msra.gmra.mxu1 %vm244_vm0, %v350_v16 }
 0x117   : > { %v343_v22 = vmin.f32 %v335_v21, 255.0  ;;  %689 = vmatpush3.bf16.msra.mxu1 %v347_v17  ;;  %690 = vmatprep.mubr.msk.bf16.mxu1 %vm858_vm1, %v857_v45  ;;  %v349_v26 = vpack.c.bf16 %v345_v24, %v344_v23 }
 0x118   : > { %700 = vmatprep.subr.bf16.mxu1 %v857_v45 }
 0x119   : > { %v348_v25 = vpack.c.bf16 %v343_v22, %v342_v19 }
 0x11b   : > { %695 = vmatpush3.bf16.msra.mxu0 %v348_v25 }
 0x11e   : > { %691 = vmatmul.mubr.msk.bf16.vlgmr.msra.gmra.mxu1 %vm244_vm0, %v350_v16  ;;  %697 = vmatmul.mubr.msk.bf16.vlgmr.msra.gmra.mxu0 %vm244_vm0, %v350_v16 }
 0x11f   : > { %701 = vmatpush3.bf16.msra.mxu1 %v349_v26  ;;  %702 = vmatprep.mubr.msk.bf16.mxu1 %vm858_vm1, %v857_v45 }
 0x126   : > { %703 = vmatmul.mubr.msk.bf16.vlgmr.msra.gmra.mxu1 %vm244_vm0, %v350_v16 }
 0x1d6   : > { %v388_v27 = vpop.f32.mrf.mxu1 }
 0x1d7   : > { %v389_v58 = vadd.f32 0.5, %v388_v27 }
 0x1d8   : > { %v686_v28 = vpop.f32.mrf.mxu1 }
 0x1d9   : > { %v394_v59 = vfloor.f32 %v389_v58 }
 0x1da   : > { %v391_v29 = vpop.f32.mrf.mxu1 }
 0x1db   : > { %v395_v60 = vmax.f32 %v394_v59, 0.0 }
 0x1dc   : > { %v687_v30 = vpop.f32.mrf.mxu1 }
 0x1dd   : > { %v396_v62 = vmin.f32 %v395_v60, 255.0 }
 0x1de   : > { %v432_v31 = vpop.f32.mrf.mxu1  ;;  %v476_v32 = vpop.f32.mrf.mxu0 }
 0x1df   : > { %v433_v33 = vadd.f32 0.5, %v432_v31  ;;  %v477_v34 = vadd.f32 0.5, %v476_v32  ;;  %v397_v63 = vmul.f32 0.003921569, %v396_v62 }
 0x1e0   : > { %v692_v35 = vpop.f32.mrf.mxu1  ;;  %v698_v36 = vpop.f32.mrf.mxu0 }
 0x1e1   : > { %v438_v37 = vfloor.f32 %v433_v33  ;;  %v482_v38 = vfloor.f32 %v477_v34 }
 0x1e2   : > { %v435_v39 = vpop.f32.mrf.mxu1  ;;  %v479_v40 = vpop.f32.mrf.mxu0 }
 0x1e3   : > { %v439_v41 = vmax.f32 %v438_v37, 0.0  ;;  %v483_v42 = vmax.f32 %v482_v38, 0.0 }
 0x1e4   : > { %v693_v43 = vpop.f32.mrf.mxu1  ;;  %v699_v44 = vpop.f32.mrf.mxu0 }
 0x1e5   : > { %v484_v45 = vmin.f32 %v483_v42, 255.0  ;;  %v440_v46 = vmin.f32 %v439_v41, 255.0 }
 0x1e6   : > { %v520_v47 = vpop.f32.mrf.mxu1 }
 0x1e7   : > { %v521_v48 = vadd.f32 0.5, %v520_v47  ;;  %v441_v49 = vmul.f32 0.003921569, %v440_v46  ;;  %v485_v51 = vmul.f32 0.003921569, %v484_v45 }
 0x1e8   : > { %v704_v50 = vpop.f32.mrf.mxu1 }
 0x1e9   : > { %v526_v52 = vfloor.f32 %v521_v48  ;;  %531 = vrot.lane.b32.xlu0 %v441_v49, %s859_s8 }
 0x1ea   : > { %v523_v53 = vpop.f32.mrf.mxu1 }
 0x1eb   : > { %v527_v54 = vmax.f32 %v526_v52, 0.0 }
 0x1ec   : > { %v705_v55 = vpop.f32.mrf.mxu1 }
 0x1ed   : > { %535 = vrot.lane.b32.xlu0 %v485_v51, %s860_s17  ;;  %v528_v56 = vmin.f32 %v527_v54, 255.0 }
 0x1ef   : > { %v529_v57 = vmul.f32 0.003921569, %v528_v56 }
 0x1f1   : > { %539 = vrot.lane.b32.xlu1 %v529_v57, %s861_s19 }
 0x25b   : > { %v532_v61 = vpop.permute.xlu0 %531 }
 0x25c   : > { %v543_v1 = vsel %vm542_vm2, %v397_v63, %v532_v61 }
 0x25f   : > { %v536_v0 = vpop.permute.xlu0 %535 }
 0x260   : > { %v545_v2 = vsel %vm544_vm3, %v543_v1, %v536_v0 }
 0x263   : > { %v540_v3 = vpop.permute.xlu1 %539 }
 0x264   : > { %v547_v4 = vsel %vm546_vm4, %v545_v2, %v540_v3 }
 0x265   : > { %549 = vst.msk [vmem:[%s189_s26] sm:$0xf] %vm548_vm5, %v547_v4 }
 0x266   : > { %801 = shalt.err (!%p798_p10)
}
 0x267   : > { %s802_s4 = scalar_lea.hbm %s1011_s30, 64  ;;  %s806_s6 = scalar_lea.hbm %s1051_s3, 128 }
 0x268   : > { %p803_p0 = scmp.ne.s32.totalorder %s1011_s30, %s802_s4  ;;  %p807_p1 = scmp.lt.s32.totalorder %s1011_s30, %s1051_s3 }
 0x269   : > { %p808_p3 = scmp.lt.s32.totalorder %s806_s6, %s802_s4 }
 0x26a   : > { %p804_p2 = pnand %p803_p0, %p1060_p12 }
 0x26b   : > { %p809_p6 = por %p808_p3, %p807_p1 }
 0x26c   : > { %p805_p9 = pneg %p804_p2 }
 0x26e   : > { %p810_p11 = pnand %p809_p6, %p805_p9 }
 0x270   : > { %813 = shalt.err (!%p810_p11)
}
 0x271   : > { %708 = dma.vmem_to_hbm [thread:$0]  (%p1060_p12), %s565_s27, 64, %s1011_s30, %s551_s9  }
 0x272 PF: > { %s576_s19 = sand.u32 1, %s840_s12   ;;  %p1061_p13 = scmp.ne.s32.totalorder %s1057_s25, 0 }
 0x273   : > { %p1062_p4 = scmp.ge.s32.totalorder %s852_s15, 2  ;;  %s577_s20 = scalar_lea.sflag [#allocation4], %s576_s19 }
 0x275   : > { %p715_p5 = pnand %p1062_p4, %p1061_p13 }
 0x277   : > { %p716_p7 = pneg %p715_p5 }
 0x279   : > { %835 = dma.done.wait (%p716_p7), %s577_s20, 64  }
 0x27a   : > { %837 = vsyncadd (%p716_p7), %s577_s20, 4294967232  ;;  %p16_p8 = scmp.ge.s32.totalorder %s908_s18, 4   ;;  %s1063_s12 = smov %s844_s13 }
 0x27b   : > { %s1064_s13 = smov %s848_s14  ;;  %s1065_s14 = smov %s920_s21 }
 0x27c   : > { %s1066_s15 = smov %s908_s18  ;;  %18 = sbr.rel (!%p16_p8) target bundleno = 5 (0x5), region = 77 }
 0x281   :  { %582 = vsyncpa [#allocation3], 1 }
 0x282   :  { %584 = vsyncpa [#allocation3 + $0x1], 1 }
 0x283   :  { %585 = vsyncpa [#allocation4], 1 }
 0x284   :  { %587 = vsyncpa [#allocation4 + $0x1], 1 }

</bundles_post_ra>
